<compile_context>
chip_gen: v6e
topology: v6e:2x2x1
jax: 0.10.0
libtpu: 0.0.40
codegen_flags: <defaults>
</compile_context>

<pallas_src>
import jax
import jax.numpy as jnp
from jax.experimental import pallas as pl
from jax.experimental.pallas import tpu as pltpu


# ----------------------------- Pallas kernel ------------------------------- #
def mlp_kernel(x_ref, w_ref, b_ref, o_ref):
    # x_ref : (TM, 1024) f32
    # w_ref : (1280, 128) bf16   packed [fc1 | fc2 | fc3], zero-padded
    # b_ref : (8, 128)   f32     rows 0..2 = b1, b2, b3 (zero-padded)
    # o_ref : (TM, 128)  f32     lane-dense; cols >= 10 are exactly zero
    x = x_ref[...].astype(jnp.bfloat16)

    h1 = jnp.dot(x, w_ref[0:1024, :], preferred_element_type=jnp.float32)
    h1 = jnp.maximum(h1 + b_ref[0:1, :], 0.0)                       # ReLU, f32

    h2 = jnp.dot(h1.astype(jnp.bfloat16), w_ref[1024:1152, :],
                 preferred_element_type=jnp.float32)
    h2 = jnp.maximum(h2 + b_ref[1:2, :], 0.0)                       # ReLU, f32

    o_ref[...] = jnp.dot(h2.astype(jnp.bfloat16), w_ref[1152:1280, :],
                         preferred_element_type=jnp.float32) + b_ref[2:3, :]


def mlp_pallas(x_flat, packed_params):
    w_packed, b_packed = packed_params
    n = x_flat.shape[0]
    # Batch tile: full sublane groups; stream 256-row tiles for large batches.
    tm = 256 if n >= 256 else 8
    n_pad = ((n + tm - 1) // tm) * tm
    x_pad = jnp.zeros((n_pad, 1024), jnp.float32).at[:n].set(x_flat)

    out = pl.pallas_call(
        mlp_kernel,
        out_shape=jax.ShapeDtypeStruct((n_pad, 128), jnp.float32),
        grid_spec=pltpu.PrefetchScalarGridSpec(
            num_scalar_prefetch=0,
            grid=(n_pad // tm,),
            in_specs=[
                pl.BlockSpec((tm, 1024), lambda i: (i, 0)),   # x tile streams
                pl.BlockSpec((1280, 128), lambda i: (0, 0)),  # weights resident
                pl.BlockSpec((8, 128), lambda i: (0, 0)),     # biases resident
            ],
            out_specs=pl.BlockSpec((tm, 128), lambda i: (i, 0)),
        ),
        compiler_params=pltpu.CompilerParams(
            dimension_semantics=("parallel",)),
    )(x_pad, w_packed, b_packed)
    return out[:n, :10]


# ------------------------------ full forward ------------------------------- #
def net_forward(x, packed_params):
    # NOTE: the PyTorch forward also runs self.conv(x) but throws the result
    # away; that branch cannot affect the output and is omitted here.
    n = x.shape[0]
    x_flat = x.reshape(n, -1).astype(jnp.float32)      # (N, 1024)
    return mlp_pallas(x_flat, packed_params)


# ----------------------------- parameter init ------------------------------ #
def make_lin_params(key):
    """PyTorch nn.Linear default init: U(-1/sqrt(fan_in), 1/sqrt(fan_in))."""
    def linear(k, fan_in, fan_out):
        kw, kb = jax.random.split(k)
        bound = 1.0 / jnp.sqrt(fan_in)
        w = jax.random.uniform(kw, (fan_in, fan_out), jnp.float32, -bound, bound)
        b = jax.random.uniform(kb, (fan_out,), jnp.float32, -bound, bound)
        return w, b

    k1, k2, k3 = jax.random.split(key, 3)
    w1, b1 = linear(k1, 1024, 120)
    w2, b2 = linear(k2, 120, 84)
    w3, b3 = linear(k3, 84, 10)
    return w1, b1, w2, b2, w3, b3


def pack_lin_params(lin_params):
    """Zero-pad to (8,128)-aligned tiles, cast weights to bf16, fuse operands."""
    w1, b1, w2, b2, w3, b3 = lin_params
    w = jnp.zeros((1280, 128), jnp.float32)
    w = w.at[0:1024, :120].set(w1)          # fc1: 1024 -> 120
    w = w.at[1024:1144, :84].set(w2)        # fc2:  120 ->  84
    w = w.at[1152:1236, :10].set(w3)        # fc3:   84 ->  10
    w_bf = w.astype(jnp.bfloat16)           # (1280, 128) bf16, single operand

    b = jnp.zeros((8, 128), jnp.float32)
    b = b.at[0, :120].set(b1).at[1, :84].set(b2).at[2, :10].set(b3)
    return w_bf, b


# ------------------------------ reference path ------------------------------ #
def net_forward_ref(x, lin_params):
    w1, b1, w2, b2, w3, b3 = lin_params
    h = x.reshape(x.shape[0], -1).astype(jnp.float32)
    h = jnp.maximum(h @ w1 + b1, 0.0)
    h = jnp.maximum(h @ w2 + b2, 0.0)
    return h @ w3 + b3


if __name__ == "__main__":
    key = jax.random.PRNGKey(0)
    k_in, k_param = jax.random.split(key)

    # N=2, C=1, H=W=32  ->  1*32*32 = 1024 flat features (matches Linear(1024, 120))
    x = jax.random.normal(k_in, (2, 1, 32, 32), dtype=jnp.float32)

    lin_params = make_lin_params(k_param)
    packed = pack_lin_params(lin_params)

    out = jax.jit(net_forward)(x, packed)
    out = jax.block_until_ready(out)

    ref = net_forward_ref(x, lin_params)            # fp32 reference
    assert out.shape == (2, 10), out.shape
    # bf16 weights -> relaxed tolerance vs the fp32 reference
    assert jnp.allclose(out, ref, rtol=3e-2, atol=3e-2), "mismatch vs. reference"

    print("KERNEL_OK")
</pallas_src>

<mosaic_0001>
module attributes {stable_mosaic.version = 11 : i64} {
  func.func @mlp_kernel(%arg0: i32, %arg1: memref<8x1024xf32, #tpu.memory_space<vmem>>, %arg2: memref<1280x128xbf16, #tpu.memory_space<vmem>>, %arg3: memref<8x128xf32, #tpu.memory_space<vmem>>, %arg4: memref<8x128xf32, #tpu.memory_space<vmem>>) attributes {dimension_semantics = [#tpu.dimension_semantics<parallel>], iteration_bounds = array<i64: 1>, scalar_prefetch = 0 : i64, scratch_operands = 0 : i64, tpu.core_type = #tpu.core_type<tc>, window_params = [{transform_indices = @transform_0, window_bounds = array<i64: 8, 1024>}, {pipeline_mode = #tpu.pipeline_mode<synchronous>, transform_indices = @transform_1, window_bounds = array<i64: 1280, 128>}, {pipeline_mode = #tpu.pipeline_mode<synchronous>, transform_indices = @transform_2, window_bounds = array<i64: 8, 128>}, {transform_indices = @transform_3, window_bounds = array<i64: 8, 128>}]} {
    %c0 = arith.constant 0 : index
    %c0_0 = arith.constant 0 : index
    %0 = vector.load %arg1[%c0, %c0_0] : memref<8x1024xf32, #tpu.memory_space<vmem>>, vector<8x1024xf32>
    %1 = arith.truncf %0 : vector<8x1024xf32> to vector<8x1024xbf16>
    %c0_1 = arith.constant 0 : index
    %c0_2 = arith.constant 0 : index
    %2 = vector.load %arg2[%c0_1, %c0_2] : memref<1280x128xbf16, #tpu.memory_space<vmem>>, vector<1024x128xbf16>
    %cst = arith.constant dense<0.000000e+00> : vector<8x128xf32>
    %3 = tpu.matmul %1, %2, %cst {dimension_numbers = #tpu.dot_dimension_numbers<[1], [0], [0], [1], [0, 0, 1, 1], [], []>} : vector<8x1024xbf16>, vector<1024x128xbf16>, vector<8x128xf32> -> vector<8x128xf32>
    %c0_3 = arith.constant 0 : index
    %c0_4 = arith.constant 0 : index
    %4 = vector.load %arg3[%c0_3, %c0_4] : memref<8x128xf32, #tpu.memory_space<vmem>>, vector<1x128xf32>
    %5 = vector.broadcast %4 : vector<1x128xf32> to vector<8x128xf32>
    %6 = arith.addf %3, %5 : vector<8x128xf32>
    %cst_5 = arith.constant 0.000000e+00 : f32
    %7 = vector.broadcast %cst_5 : f32 to vector<8x128xf32>
    %8 = arith.maximumf %6, %7 : vector<8x128xf32>
    %9 = arith.truncf %8 : vector<8x128xf32> to vector<8x128xbf16>
    %c1024 = arith.constant 1024 : index
    %c0_6 = arith.constant 0 : index
    %10 = vector.load %arg2[%c1024, %c0_6] : memref<1280x128xbf16, #tpu.memory_space<vmem>>, vector<128x128xbf16>
    %cst_7 = arith.constant dense<0.000000e+00> : vector<8x128xf32>
    %11 = tpu.matmul %9, %10, %cst_7 {dimension_numbers = #tpu.dot_dimension_numbers<[1], [0], [0], [1], [0, 0, 1, 1], [], []>} : vector<8x128xbf16>, vector<128x128xbf16>, vector<8x128xf32> -> vector<8x128xf32>
    %c1 = arith.constant 1 : index
    %c0_8 = arith.constant 0 : index
    %12 = vector.load %arg3[%c1, %c0_8] : memref<8x128xf32, #tpu.memory_space<vmem>>, vector<1x128xf32>
    %13 = vector.broadcast %12 : vector<1x128xf32> to vector<8x128xf32>
    %14 = arith.addf %11, %13 : vector<8x128xf32>
    %cst_9 = arith.constant 0.000000e+00 : f32
    %15 = vector.broadcast %cst_9 : f32 to vector<8x128xf32>
    %16 = arith.maximumf %14, %15 : vector<8x128xf32>
    %17 = arith.truncf %16 : vector<8x128xf32> to vector<8x128xbf16>
    %c1152 = arith.constant 1152 : index
    %c0_10 = arith.constant 0 : index
    %18 = vector.load %arg2[%c1152, %c0_10] : memref<1280x128xbf16, #tpu.memory_space<vmem>>, vector<128x128xbf16>
    %cst_11 = arith.constant dense<0.000000e+00> : vector<8x128xf32>
    %19 = tpu.matmul %17, %18, %cst_11 {dimension_numbers = #tpu.dot_dimension_numbers<[1], [0], [0], [1], [0, 0, 1, 1], [], []>} : vector<8x128xbf16>, vector<128x128xbf16>, vector<8x128xf32> -> vector<8x128xf32>
    %c2 = arith.constant 2 : index
    %c0_12 = arith.constant 0 : index
    %20 = vector.load %arg3[%c2, %c0_12] : memref<8x128xf32, #tpu.memory_space<vmem>>, vector<1x128xf32>
    %21 = vector.broadcast %20 : vector<1x128xf32> to vector<8x128xf32>
    %22 = arith.addf %19, %21 : vector<8x128xf32>
    %c0_13 = arith.constant 0 : index
    %c0_14 = arith.constant 0 : index
    %23 = vector.load %arg4[%c0_13, %c0_14] : memref<8x128xf32, #tpu.memory_space<vmem>>, vector<8x128xf32>
    tpu.vector_store %arg4[%c0_13, %c0_14], %22 {strides = array<i32>} : memref<8x128xf32, #tpu.memory_space<vmem>>, vector<8x128xf32>,
    return
  }
  func.func @transform_0(%arg0: i32) -> (i32, i32) {
    %c0_i32 = arith.constant 0 : i32
    %c0_i32_0 = arith.constant 0 : i32
    return %arg0, %c0_i32 : i32, i32
  }
  func.func @transform_1(%arg0: i32) -> (i32, i32) {
    %c0_i32 = arith.constant 0 : i32
    %c0_i32_0 = arith.constant 0 : i32
    %c0_i32_1 = arith.constant 0 : i32
    return %c0_i32, %c0_i32_0 : i32, i32
  }
  func.func @transform_2(%arg0: i32) -> (i32, i32) {
    %c0_i32 = arith.constant 0 : i32
    %c0_i32_0 = arith.constant 0 : i32
    %c0_i32_1 = arith.constant 0 : i32
    return %c0_i32, %c0_i32_0 : i32, i32
  }
  func.func @transform_3(%arg0: i32) -> (i32, i32) {
    %c0_i32 = arith.constant 0 : i32
    %c0_i32_0 = arith.constant 0 : i32
    return %arg0, %c0_i32 : i32, i32
  }
}

</mosaic_0001>

<bundles_post_ra>
// kernel: net_forward.1
= control target key start
LH: loop header
LB: loop body
LE: loop exit
PB: predicated region body
PF: predicated region fallthrough
CT: control target
= control target key end

     0   :  { %8 = vsyncpa [#allocation3], 0  ;;  %s1286_s12 = smov [#allocation2]   ;;  %s1368_s0 = inlined_call_operand.vmem [shape: f32[8,1024], index: 0, kind: input, shape index: {}]   ;;  %s1369_s1 = inlined_call_operand.hbm [shape: bf16[1280,128], index: 1, kind: input, shape index: {}]   ;;  %s1370_s2 = inlined_call_operand.vmem [shape: f32[8,128], index: 2, kind: input, shape index: {}]   ;;  %s1371_s3 = inlined_call_operand.vmem [shape: f32[8,128], index: 3, kind: output, shape index: {}]  }
   0x1   :  { %s16_s13 = sshll.u32 %s1286_s12, 4  ;;  %s17_s13 = int_to_ptr.vmem [resolvable:$true] %s16_s13 }
   0x2   :  { %s1272_s14 = scalar_lea.vmem %s17_s13, 10240  ;;  %p1277_p1 = scmp.lt.s32.totalorder %s17_s13, %s17_s13 }
   0x3   :  { %p1273_p0 = scmp.ne.s32.totalorder %s17_s13, %s1272_s14  ;;  %p1278_p2 = scmp.lt.s32.totalorder %s1272_s14, %s1272_s14 }
   0x5   :  { %p1279_p3 = por %p1278_p2, %p1277_p1 }
   0x7   :  { %p1280_p4 = pnand %p1279_p3, %p1273_p0 }
   0x9   :  { %1283 = shalt.err (!%p1280_p4)
}
   0xa   :  { %s1287_s15 = smov 64   ;;  %s1288_s16 = smov 4  }
   0xb   :  { %22 = dma.hbm_to_vmem [thread:$0]  %s1369_s1, 10240, %s17_s13, [#allocation3], %s1287_s15, %s1287_s15, %s1288_s16  }
   0xc   :  { %1284 = dma.done.wait [#allocation3], 10240  }
   0xd   :  { %1285 = vsyncadd [#allocation3], 4294957056  ;;  %v1184_v0 = vld [vmem:[#allocation2 + $0x78] sm:$0xff]   ;;  %v1188_v4 = vld [vmem:[#allocation2 + $0x70] sm:$0xff]   ;;  %vm1290_vm0 = vmmov 0  }
   0xe   :  { %v1185_v1 = vld [vmem:[#allocation2 + $0xf8] sm:$0xff]   ;;  %1033 = vmatprep.subr.bf16.mxu0 %v1184_v0  ;;  %v1189_v5 = vld [vmem:[#allocation2 + $0xf0] sm:$0xff]   ;;  %v1192_v8 = vld [vmem:[#allocation2 + $0x68] sm:$0xff]  }
   0xf   :  { %v1186_v2 = vld [vmem:[#allocation2 + $0x38] sm:$0xff]   ;;  %1055 = vmatprep.subr.bf16.mxu1 %v1185_v1  ;;  %v1190_v6 = vld [vmem:[#allocation2 + $0x30] sm:$0xff]   ;;  %v1193_v9 = vld [vmem:[#allocation2 + $0xe8] sm:$0xff]  }
  0x10   :  { %v1187_v3 = vld [vmem:[#allocation2 + $0xb8] sm:$0xff]   ;;  %1034 = vmatpush3.bf16.msra.mxu0 %v1186_v2  ;;  %v1191_v7 = vld [vmem:[#allocation2 + $0xb0] sm:$0xff]   ;;  %v1194_v10 = vld [vmem:[#allocation2 + $0x28] sm:$0xff]  }
  0x11   :  { %1056 = vmatpush3.bf16.msra.mxu1 %v1187_v3  ;;  %1035 = vmatprep.subr.bf16.mxu0 %v1188_v4  ;;  %v1195_v11 = vld [vmem:[#allocation2 + $0xa8] sm:$0xff]   ;;  %v1196_v12 = vld [vmem:[#allocation2 + $0x60] sm:$0xff]   ;;  %v1200_v16 = vld [vmem:[#allocation2 + $0x58] sm:$0xff]  }
  0x12   :  { %1057 = vmatprep.subr.bf16.mxu1 %v1189_v5  ;;  %v1197_v13 = vld [vmem:[#allocation2 + $0xe0] sm:$0xff]   ;;  %v1201_v17 = vld [vmem:[#allocation2 + $0xd8] sm:$0xff]   ;;  %v1204_v20 = vld [vmem:[#allocation2 + $0x50] sm:$0xff]  }
  0x13   :  { %v1198_v14 = vld [vmem:[#allocation2 + $0x20] sm:$0xff]   ;;  %v1202_v18 = vld [vmem:[#allocation2 + $0x18] sm:$0xff]   ;;  %v1205_v21 = vld [vmem:[#allocation2 + $0xd0] sm:$0xff]  }
  0x14   :  { %1036 = vmatpush3.bf16.msra.mxu0 %v1190_v6  ;;  %v1199_v15 = vld [vmem:[#allocation2 + $0xa0] sm:$0xff]   ;;  %v1203_v19 = vld [vmem:[#allocation2 + $0x98] sm:$0xff]   ;;  %v1206_v22 = vld [vmem:[#allocation2 + $0x10] sm:$0xff]  }
  0x15   :  { %1058 = vmatpush3.bf16.msra.mxu1 %v1191_v7  ;;  %1037 = vmatprep.subr.bf16.mxu0 %v1192_v8  ;;  %v1207_v23 = vld [vmem:[#allocation2 + $0x90] sm:$0xff]   ;;  %v1208_v24 = vld [vmem:[#allocation2 + $0x48] sm:$0xff]   ;;  %v1212_v28 = vld [vmem:[#allocation2 + $0x40] sm:$0xff]  }
  0x16   :  { %1059 = vmatprep.subr.bf16.mxu1 %v1193_v9  ;;  %v1209_v25 = vld [vmem:[#allocation2 + $0xc8] sm:$0xff]   ;;  %v1213_v29 = vld [vmem:[#allocation2 + $0xc0] sm:$0xff]   ;;  %v32_v33 = vld [vmem:[%s1368_s0 + $0x18] sm:$0xff] }
  0x17   :  { %v1210_v26 = vld [vmem:[#allocation2 + $0x8] sm:$0xff]   ;;  %v1214_v30 = vld [vmem:[#allocation2] sm:$0xff]   ;;  %v40_v36 = vpack.c.bf16 %v32_v33, %v32_v33  ;;  %v31_v38 = vld [vmem:[%s1368_s0 + $0x10] sm:$0xff] }
  0x18   :  { %1038 = vmatpush3.bf16.msra.mxu0 %v1194_v10  ;;  %v1211_v27 = vld [vmem:[#allocation2 + $0x88] sm:$0xff]   ;;  %v1215_v31 = vld [vmem:[#allocation2 + $0x80] sm:$0xff]   ;;  %v39_v39 = vpack.c.bf16 %v31_v38, %v31_v38  ;;  %v1216_v40 = vld [vmem:[#allocation2 + $0x178] sm:$0xff]  }
  0x19   :  { %1060 = vmatpush3.bf16.msra.mxu1 %v1195_v11  ;;  %1039 = vmatprep.subr.bf16.mxu0 %v1196_v12  ;;  %v30_v32 = vld [vmem:[%s1368_s0 + $0x8] sm:$0xff]  ;;  %v29_v34 = vld [vmem:[%s1368_s0] sm:$0xff]  ;;  %v1217_v41 = vld [vmem:[#allocation2 + $0x1f8] sm:$0xff]  }
  0x1a   :  { %1061 = vmatprep.subr.bf16.mxu1 %v1197_v13  ;;  %v38_v35 = vpack.c.bf16 %v30_v32, %v30_v32  ;;  %v37_v37 = vpack.c.bf16 %v29_v34, %v29_v34  ;;  %634 = vmatprep.mubr.bf16.mxu1 %v40_v36  ;;  %v1218_v42 = vld [vmem:[#allocation2 + $0x138] sm:$0xff]   ;;  %v1220_v44 = vld [vmem:[#allocation2 + $0x170] sm:$0xff]   ;;  %v1224_v48 = vld [vmem:[#allocation2 + $0x168] sm:$0xff]  }
  0x1b   :  { %v1219_v43 = vld [vmem:[#allocation2 + $0x1b8] sm:$0xff]   ;;  %v1221_v45 = vld [vmem:[#allocation2 + $0x1f0] sm:$0xff]   ;;  %v1225_v49 = vld [vmem:[#allocation2 + $0x1e8] sm:$0xff]  }
  0x1c   :  { %1040 = vmatpush3.bf16.msra.mxu0 %v1198_v14  ;;  %594 = vmatprep.mubr.bf16.mxu0 %v38_v35  ;;  %v1222_v46 = vld [vmem:[#allocation2 + $0x130] sm:$0xff]   ;;  %v1226_v50 = vld [vmem:[#allocation2 + $0x128] sm:$0xff]   ;;  %v1228_v52 = vld [vmem:[#allocation2 + $0x160] sm:$0xff]  }
  0x1d   :  { %1062 = vmatpush3.bf16.msra.mxu1 %v1199_v15  ;;  %1041 = vmatprep.subr.bf16.mxu0 %v1200_v16  ;;  %v1223_v47 = vld [vmem:[#allocation2 + $0x1b0] sm:$0xff]   ;;  %v1227_v51 = vld [vmem:[#allocation2 + $0x1a8] sm:$0xff]   ;;  %v1229_v53 = vld [vmem:[#allocation2 + $0x1e0] sm:$0xff]  }
  0x1e   :  { %1063 = vmatprep.subr.bf16.mxu1 %v1201_v17  ;;  %v1230_v54 = vld [vmem:[#allocation2 + $0x120] sm:$0xff]   ;;  %v1232_v56 = vld [vmem:[#allocation2 + $0x158] sm:$0xff]   ;;  %v1236_v60 = vld [vmem:[#allocation2 + $0x150] sm:$0xff]   ;;  %v1289_v17 = vmov 0.0  }
  0x1f   :  { %v1231_v55 = vld [vmem:[#allocation2 + $0x1a0] sm:$0xff]   ;;  %v1233_v57 = vld [vmem:[#allocation2 + $0x1d8] sm:$0xff]   ;;  %v1237_v61 = vld [vmem:[#allocation2 + $0x1d0] sm:$0xff]  }
  0x20   :  { %1042 = vmatpush3.bf16.msra.mxu0 %v1202_v18  ;;  %v1234_v58 = vld [vmem:[#allocation2 + $0x118] sm:$0xff]   ;;  %v1238_v62 = vld [vmem:[#allocation2 + $0x110] sm:$0xff]   ;;  %v1240_v0 = vld [vmem:[#allocation2 + $0x148] sm:$0xff]  }
  0x21   :  { %1064 = vmatpush3.bf16.msra.mxu1 %v1203_v19  ;;  %1043 = vmatprep.subr.bf16.mxu0 %v1204_v20  ;;  %v1235_v59 = vld [vmem:[#allocation2 + $0x198] sm:$0xff]   ;;  %v1239_v63 = vld [vmem:[#allocation2 + $0x190] sm:$0xff]   ;;  %v1241_v1 = vld [vmem:[#allocation2 + $0x1c8] sm:$0xff]  }
  0x22   :  { %1065 = vmatprep.subr.bf16.mxu1 %v1205_v21  ;;  %v1242_v2 = vld [vmem:[#allocation2 + $0x108] sm:$0xff]   ;;  %v1244_v4 = vld [vmem:[#allocation2 + $0x140] sm:$0xff]   ;;  %v36_v9 = vld [vmem:[%s1368_s0 + $0x38] sm:$0xff] }
  0x23   :  { %v1243_v3 = vld [vmem:[#allocation2 + $0x188] sm:$0xff]   ;;  %v1245_v5 = vld [vmem:[#allocation2 + $0x1c0] sm:$0xff]   ;;  %v44_v11 = vpack.c.bf16 %v36_v9, %v36_v9  ;;  %v35_v13 = vld [vmem:[%s1368_s0 + $0x30] sm:$0xff] }
  0x24   :  { %1044 = vmatpush3.bf16.msra.mxu0 %v1206_v22  ;;  %v1246_v6 = vld [vmem:[#allocation2 + $0x100] sm:$0xff]   ;;  %v34_v8 = vld [vmem:[%s1368_s0 + $0x28] sm:$0xff]  ;;  %v43_v15 = vpack.c.bf16 %v35_v13, %v35_v13  ;;  %v1248_v16 = vld [vmem:[#allocation2 + $0x238] sm:$0xff]  }
  0x25   :  { %1066 = vmatpush3.bf16.msra.mxu1 %v1207_v23  ;;  %1045 = vmatprep.subr.bf16.mxu0 %v1208_v24  ;;  %v1247_v7 = vld [vmem:[#allocation2 + $0x180] sm:$0xff]   ;;  %v42_v10 = vpack.c.bf16 %v34_v8, %v34_v8  ;;  %v1249_v18 = vld [vmem:[#allocation2 + $0x230] sm:$0xff]   ;;  %v1250_v19 = vld [vmem:[#allocation2 + $0x228] sm:$0xff]  }
  0x26   :  { %1067 = vmatprep.subr.bf16.mxu1 %v1209_v25  ;;  %v33_v12 = vld [vmem:[%s1368_s0 + $0x20] sm:$0xff]  ;;  %v1252_v21 = vld [vmem:[#allocation2 + $0x218] sm:$0xff]   ;;  %v1253_v22 = vld [vmem:[#allocation2 + $0x210] sm:$0xff]  }
  0x27   :  { %v41_v14 = vpack.c.bf16 %v33_v12, %v33_v12  ;;  %v1251_v20 = vld [vmem:[#allocation2 + $0x220] sm:$0xff]   ;;  %v1254_v23 = vld [vmem:[#allocation2 + $0x208] sm:$0xff]   ;;  %v1256_v25 = vld [vmem:[#allocation2 + $0x278] sm:$0xff]  }
  0x28   :  { %1046 = vmatpush3.bf16.msra.mxu0 %v1210_v26  ;;  %v1255_v24 = vld [vmem:[#allocation2 + $0x200] sm:$0xff]   ;;  %v1257_v26 = vld [vmem:[#allocation2 + $0x270] sm:$0xff]  }
  0x29   :  { %1068 = vmatpush3.bf16.msra.mxu1 %v1211_v27  ;;  %1047 = vmatprep.subr.bf16.mxu0 %v1212_v28  ;;  %v1258_v27 = vld [vmem:[#allocation2 + $0x268] sm:$0xff]   ;;  %v1259_v28 = vld [vmem:[#allocation2 + $0x260] sm:$0xff]  }
  0x2a   :  { %1069 = vmatprep.subr.bf16.mxu1 %v1213_v29  ;;  %v1260_v29 = vld [vmem:[#allocation2 + $0x258] sm:$0xff]  }
  0x2c   :  { %1048 = vmatpush3.bf16.msra.mxu0 %v1214_v30  ;;  %v1261_v30 = vld [vmem:[#allocation2 + $0x250] sm:$0xff]  }
  0x2d   :  { %1070 = vmatpush3.bf16.msra.mxu1 %v1215_v31  ;;  %1077 = vmatprep.subr.bf16.mxu0 %v1216_v40  ;;  %v950_v40 = vld [vmem:[%s1370_s2] ss:$0 sm:$0xff] }
  0x2e   :  { %1099 = vmatprep.subr.bf16.mxu1 %v1217_v41 }
  0x2f   :  { %595 = vmatmul.mubr.bf16.vlgmr.msra.gmra.mxu0 %v37_v37 }
  0x30   :  { %635 = vmatmul.mubr.bf16.vlgmr.msra.gmra.mxu1 %v39_v39  ;;  %1078 = vmatpush3.bf16.msra.mxu0 %v1218_v42 }
  0x31   :  { %1100 = vmatpush3.bf16.msra.mxu1 %v1219_v43  ;;  %1079 = vmatprep.subr.bf16.mxu0 %v1220_v44 }
  0x32   :  { %1101 = vmatprep.subr.bf16.mxu1 %v1221_v45  ;;  %674 = vmatprep.mubr.bf16.mxu0 %v42_v10 }
  0x33   :  { %714 = vmatprep.mubr.bf16.mxu1 %v44_v11 }
  0x34   :  { %1080 = vmatpush3.bf16.msra.mxu0 %v1222_v46 }
  0x35   :  { %1102 = vmatpush3.bf16.msra.mxu1 %v1223_v47  ;;  %1081 = vmatprep.subr.bf16.mxu0 %v1224_v48 }
  0x36   :  { %1103 = vmatprep.subr.bf16.mxu1 %v1225_v49 }
  0x38   :  { %1082 = vmatpush3.bf16.msra.mxu0 %v1226_v50 }
  0x39   :  { %1104 = vmatpush3.bf16.msra.mxu1 %v1227_v51  ;;  %1083 = vmatprep.subr.bf16.mxu0 %v1228_v52 }
  0x3a   :  { %1105 = vmatprep.subr.bf16.mxu1 %v1229_v53 }
  0x3c   :  { %1084 = vmatpush3.bf16.msra.mxu0 %v1230_v54 }
  0x3d   :  { %1106 = vmatpush3.bf16.msra.mxu1 %v1231_v55  ;;  %1085 = vmatprep.subr.bf16.mxu0 %v1232_v56 }
  0x3e   :  { %1107 = vmatprep.subr.bf16.mxu1 %v1233_v57 }
  0x40   :  { %1086 = vmatpush3.bf16.msra.mxu0 %v1234_v58  ;;  %v1262_v58 = vld [vmem:[#allocation2 + $0x248] sm:$0xff]  }
  0x41   :  { %1108 = vmatpush3.bf16.msra.mxu1 %v1235_v59  ;;  %1087 = vmatprep.subr.bf16.mxu0 %v1236_v60  ;;  %v1263_v59 = vld [vmem:[#allocation2 + $0x240] sm:$0xff]  }
  0x42   :  { %1109 = vmatprep.subr.bf16.mxu1 %v1237_v61  ;;  %v1015_v60 = vld [vmem:[%s1370_s2 + $0x1] ss:$0 sm:$0xff] }
  0x44   :  { %1088 = vmatpush3.bf16.msra.mxu0 %v1238_v62 }
  0x45   :  { %1110 = vmatpush3.bf16.msra.mxu1 %v1239_v63  ;;  %1089 = vmatprep.subr.bf16.mxu0 %v1240_v0 }
  0x46   :  { %1111 = vmatprep.subr.bf16.mxu1 %v1241_v1 }
  0x48   :  { %1090 = vmatpush3.bf16.msra.mxu0 %v1242_v2 }
  0x49   :  { %1112 = vmatpush3.bf16.msra.mxu1 %v1243_v3  ;;  %1091 = vmatprep.subr.bf16.mxu0 %v1244_v4  ;;  %v1024_v4 = vld [vmem:[%s1370_s2 + $0x2] ss:$0 sm:$0xff] }
  0x4a   :  { %1113 = vmatprep.subr.bf16.mxu1 %v1245_v5 }
  0x4c   :  { %1092 = vmatpush3.bf16.msra.mxu0 %v1246_v6 }
  0x4d   :  { %1114 = vmatpush3.bf16.msra.mxu1 %v1247_v7  ;;  %1139 = vmatprep.subr.bf16.mxu0 %v1289_v17 }
  0x4e   :  { %1159 = vmatprep.subr.bf16.mxu1 %v1289_v17 }
  0x4f   :  { %675 = vmatmul.mubr.bf16.vlgmr.msra.gmra.mxu0 %v41_v14 }
  0x50   :  { %715 = vmatmul.mubr.bf16.vlgmr.msra.gmra.mxu1 %v43_v15  ;;  %1140 = vmatpush3.bf16.msra.mxu0 %v1248_v16 }
  0x51   :  { %1141 = vmatprep.subr.bf16.mxu0 %v1289_v17  ;;  %1155 = vmatprep.mubr.msk.bf16.mxu0 %vm1290_vm0, %v1289_v17 }
  0x52   :  { %1175 = vmatprep.mubr.msk.bf16.mxu1 %vm1290_vm0, %v1289_v17  ;;  %1160 = vmatpush3.bf16.msra.mxu1 %v1256_v25 }
  0x53   :  { %1161 = vmatprep.subr.bf16.mxu1 %v1289_v17 }
  0x54   :  { %1142 = vmatpush3.bf16.msra.mxu0 %v1249_v18 }
  0x55   :  { %1143 = vmatprep.subr.bf16.mxu0 %v1289_v17 }
  0x56   :  { %1162 = vmatpush3.bf16.msra.mxu1 %v1257_v26 }
  0x57   :  { %1163 = vmatprep.subr.bf16.mxu1 %v1289_v17 }
  0x58   :  { %1144 = vmatpush3.bf16.msra.mxu0 %v1250_v19 }
  0x59   :  { %1145 = vmatprep.subr.bf16.mxu0 %v1289_v17 }
  0x5a   :  { %1164 = vmatpush3.bf16.msra.mxu1 %v1258_v27 }
  0x5b   :  { %1165 = vmatprep.subr.bf16.mxu1 %v1289_v17 }
  0x5c   :  { %1146 = vmatpush3.bf16.msra.mxu0 %v1251_v20 }
  0x5d   :  { %1147 = vmatprep.subr.bf16.mxu0 %v1289_v17 }
  0x5e   :  { %1166 = vmatpush3.bf16.msra.mxu1 %v1259_v28 }
  0x5f   :  { %1167 = vmatprep.subr.bf16.mxu1 %v1289_v17 }
  0x60   :  { %1148 = vmatpush3.bf16.msra.mxu0 %v1252_v21 }
  0x61   :  { %1149 = vmatprep.subr.bf16.mxu0 %v1289_v17 }
  0x62   :  { %1168 = vmatpush3.bf16.msra.mxu1 %v1260_v29 }
  0x63   :  { %1169 = vmatprep.subr.bf16.mxu1 %v1289_v17 }
  0x64   :  { %1150 = vmatpush3.bf16.msra.mxu0 %v1253_v22 }
  0x65   :  { %1151 = vmatprep.subr.bf16.mxu0 %v1289_v17 }
  0x66   :  { %1170 = vmatpush3.bf16.msra.mxu1 %v1261_v30 }
  0x67   :  { %1171 = vmatprep.subr.bf16.mxu1 %v1289_v17 }
  0x68   :  { %1152 = vmatpush3.bf16.msra.mxu0 %v1254_v23 }
  0x69   :  { %1153 = vmatprep.subr.bf16.mxu0 %v1289_v17 }
  0x6a   :  { %1172 = vmatpush3.bf16.msra.mxu1 %v1262_v58 }
  0x6b   :  { %1173 = vmatprep.subr.bf16.mxu1 %v1289_v17 }
  0x6c   :  { %1154 = vmatpush3.bf16.msra.mxu0 %v1255_v24 }
  0x6e   :  { %1174 = vmatpush3.bf16.msra.mxu1 %v1263_v59 }
  0xef   :  { %v1049_v31 = vpop.f32.mrf.mxu0 }
  0xf0   :  { %v1071_v32 = vpop.f32.mrf.mxu1 }
  0xf1   :  { %v1050_v33 = vpop.f32.mrf.mxu0 }
  0xf2   :  { %v1072_v34 = vpop.f32.mrf.mxu1  ;;  %v1051_v39 = vadd.f32 %v1050_v33, %v1049_v31 }
  0xf3   :  { %v1052_v35 = vpop.f32.mrf.mxu0  ;;  %v1073_v42 = vadd.f32 %v1072_v34, %v1071_v32 }
  0xf4   :  { %v1074_v36 = vpop.f32.mrf.mxu1  ;;  %v597_v41 = vadd.f32 %v1051_v39, %v950_v40 }
  0xf5   :  { %v1053_v37 = vpop.f32.mrf.mxu0 }
  0xf6   :  { %v1075_v38 = vpop.f32.mrf.mxu1  ;;  %v637_v46 = vadd.f32 %v1073_v42, %v597_v41 }
 0x10f   :  { %v1093_v43 = vpop.f32.mrf.mxu0 }
 0x110   :  { %v1115_v44 = vpop.f32.mrf.mxu1 }
 0x111   :  { %v1094_v45 = vpop.f32.mrf.mxu0 }
 0x112   :  { %v1095_v47 = vadd.f32 %v1094_v45, %v1093_v43  ;;  %v1116_v48 = vpop.f32.mrf.mxu1 }
 0x113   :  { %v1096_v49 = vpop.f32.mrf.mxu0  ;;  %v1117_v51 = vadd.f32 %v1116_v48, %v1115_v44 }
 0x114   :  { %v677_v50 = vadd.f32 %v1095_v47, %v637_v46  ;;  %v1118_v52 = vpop.f32.mrf.mxu1 }
 0x115   :  { %v1097_v53 = vpop.f32.mrf.mxu0 }
 0x116   :  { %v717_v54 = vadd.f32 %v1117_v51, %v677_v50  ;;  %v1119_v55 = vpop.f32.mrf.mxu1 }
 0x118   :  { %v722_v56 = vmax.f32 %v717_v54, 0.0 }
 0x11a   :  { %v723_v57 = vpack.c.bf16 %v722_v56, %v722_v56 }
 0x11c   :  { %1156 = vmatmul.mubr.bf16.vlgmr.msra.gmra.mxu0 %v723_v57 }
 0x1dc   :  { %v827_v61 = vpop.f32.mrf.mxu0 }
 0x1dd   :  { %v828_v62 = vadd.f32 %v1015_v60, %v827_v61 }
 0x1de   :  { %v1157_v63 = vpop.f32.mrf.mxu0 }
 0x1df   :  { %v833_v0 = vmax.f32 %v828_v62, 0.0 }
 0x1e0   :  { %v830_v1 = vpop.f32.mrf.mxu0 }
 0x1e1   :  { %v834_v2 = vpack.c.bf16 %v833_v0, %v833_v0 }
 0x1e2   :  { %v1158_v3 = vpop.f32.mrf.mxu0 }
 0x1e3   :  { %1176 = vmatmul.mubr.bf16.vlgmr.msra.gmra.mxu1 %v834_v2 }
 0x2a3   :  { %v938_v5 = vpop.f32.mrf.mxu1 }
 0x2a4   :  { %v939_v6 = vadd.f32 %v1024_v4, %v938_v5 }
 0x2a5   :  { %v1177_v7 = vpop.f32.mrf.mxu1 }
 0x2a6   :  { %944 = vst [vmem:[%s1371_s3] sm:$0xff] %v939_v6 }
 0x2a7   :  { %v941_v8 = vpop.f32.mrf.mxu1 }
 0x2a9   :  { %v1178_v9 = vpop.f32.mrf.mxu1 }
 0x2aa   :  { %949 = vsyncpa [#allocation3], 1 }

</bundles_post_ra>
